<compile_context>
chip_gen: v5e
topology: v5e:2x2
jax: 0.10.0
libtpu: 0.0.40
codegen_flags: <defaults>
</compile_context>

<pallas_src>
import functools

import jax
import jax.numpy as jnp
from jax.experimental import pallas as pl
from jax.experimental.pallas import tpu as pltpu


def cbam_kernel(x_ref, wfc_ref, bfc_ref, wrows_ref, mask_ref, o_ref, *, W, HW, K):
    """One batch element per grid step; x_ref block is (1, C, HWp)."""
    C = x_ref.shape[1]
    HWp = x_ref.shape[2]
    pad = K // 2

    # Cast once so bf16 inputs still accumulate in f32.
    x = x_ref[0].astype(jnp.float32)                      # (C, HWp)

    # ---------------- Channel attention ----------------
    # Global average pool as an MXU matvec (contract HWp); padded lanes are
    # zero, so summing over HWp and dividing by the true HW is exact.
    ones_hw = jnp.ones((HWp, 1), jnp.float32)
    pooled = jnp.dot(x, ones_hw, preferred_element_type=jnp.float32) * (1.0 / HW)
    logits = jnp.dot(wfc_ref[...], pooled,
                     preferred_element_type=jnp.float32) + bfc_ref[...]
    ca = jax.nn.sigmoid(logits)                           # (C, 1)
    x1 = x * ca                                           # (C, HWp) channel-gated

    # ---------------- Spatial maps ----------------
    # Channel mean on the MXU (cross-sublane reduce); channel max on the VPU.
    ones_c = jnp.full((1, C), 1.0 / C, jnp.float32)
    avg_map = jnp.dot(ones_c, x1, preferred_element_type=jnp.float32)   # (1, HWp)
    max_map = jnp.max(x1, axis=0, keepdims=True)                        # (1, HWp)

    # ---------------- KxK spatial conv on the flattened maps ----------------
    # Sublane-dense formulation:
    #   * stack[(m, dh), p] = map_m[p + (dh - pad) * W]  (zero where the source
    #     row is out of range), built once via zero-padded static slices,
    #   * for each column offset dw: lane-rotate the whole stack by (dw - pad)
    #     on the XLU, contract the 2K rows with the per-dw weight column on the
    #     MXU (per-dh weighting + dh reduction in one op), and apply the
    #     column-validity mask once.
    #
    # Correctness of the flat-shift + column-mask scheme: for any output p with
    # a valid column (0 <= col(p) + dw - pad < W) the rotated read stays inside
    # the same row, so it is exactly the conv tap; every wrapped or
    # row-crossing read has an invalid column and is zeroed by mask[dw].  Row
    # over/underflow reads land in the stack's zero padding (or in the zeroed
    # HW..HWp lane pad), matching the conv's zero padding.
    P = pad * W
    zrow = jnp.zeros((1, P), jnp.float32)
    avg_p = jnp.concatenate([zrow, avg_map, zrow], axis=1)       # (1, HWp + 2P)
    max_p = jnp.concatenate([zrow, max_map, zrow], axis=1)
    rows = ([avg_p[:, dh * W: dh * W + HWp] for dh in range(K)]
            + [max_p[:, dh * W: dh * W + HWp] for dh in range(K)])
    stack = jnp.concatenate(rows, axis=0)                        # (2K, HWp)

    mask = mask_ref[...]                                         # (K, HWp)
    wrows = wrows_ref[...]                                       # (K, 2K)

    acc = jnp.zeros((1, HWp), jnp.float32)
    for dw in range(K):                                          # K static iters
        d = dw - pad
        shifted = stack if d == 0 else pltpu.roll(stack, shift=(-d) % HWp, axis=1)
        # (1, 2K) @ (2K, HWp): per-dh weighting + dh reduction on the MXU.
        r = jnp.dot(wrows[dw:dw + 1, :], shifted,
                    preferred_element_type=jnp.float32)          # (1, HWp)
        acc = acc + r * mask[dw:dw + 1, :]                       # one mask mul / dw
    sa = jax.nn.sigmoid(acc)                                     # (1, HWp)

    # ---------------- Gated output (lane-dense store) ----------------
    o_ref[0] = (x1 * sa).astype(o_ref.dtype)


def cbam(x, params):
    """x: (N, C, H, W). params: {"w_fc": (C,C), "b_fc": (C,), "w_sp": (2,K,K)}."""
    N, C, H, W = x.shape
    HW = H * W
    w_fc = params["w_fc"].astype(jnp.float32)                     # (C, C)
    b_fc = params["b_fc"].reshape(C, 1).astype(jnp.float32)       # (C, 1)
    w_sp = params["w_sp"].astype(jnp.float32)                     # (2, K, K)
    K = w_sp.shape[-1]
    assert w_sp.shape == (2, K, K) and K in (3, 7)
    pad = K // 2

    # Lane-dense padding of the flattened spatial axis (zero-filled).
    HWp = ((HW + 127) // 128) * 128
    x_flat = x.reshape(N, C, HW)
    if HWp != HW:
        x_flat = jnp.pad(x_flat, ((0, 0), (0, 0), (0, HWp - HW)))

    # Per-dw weight rows: w_rows[dw] = [w_sp[0, :, dw] ++ w_sp[1, :, dw]].
    w_rows = jnp.concatenate([w_sp[0].T, w_sp[1].T], axis=1)      # (K, 2K)

    # Per-dw column-validity masks over the padded flat axis.
    col = jnp.arange(HWp, dtype=jnp.int32) % W
    offs = jnp.arange(K, dtype=jnp.int32) - pad
    shifted_col = col[None, :] + offs[:, None]
    mask = ((shifted_col >= 0) & (shifted_col < W)).astype(jnp.float32)  # (K, HWp)

    itemsize = jnp.dtype(x.dtype).itemsize
    # Fused per-batch footprint: double-buffered in/out slabs + f32 working set.
    vmem_need = (4 * C * HWp * itemsize
                 + (2 * C + 6 * K + 10) * HWp * 4
                 + (C * C + 2 * C + 2 * K * K) * 4
                 + (2 << 20))
    vmem_limit = None
    if vmem_need > (16 << 20):        # conservative scoped-VMEM default (v5e)
        try:                          # clamp to the real device capacity (v7x: 64 MiB)
            cap = int(pltpu.get_tpu_info().vmem_capacity_bytes)
        except Exception:
            cap = 64 << 20
        vmem_limit = int(min(vmem_need * 5 // 4, cap * 7 // 8))
    # TODO(synk): two-pass tiled fallback when the fused slab exceeds even the
    # full device VMEM budget (huge C*H*W on v7x).

    cost = pl.CostEstimate(
        flops=int(N * (8 * C * HWp + 2 * C * C + 4 * K * K * HWp)),
        transcendentals=int(N * (C + HWp)),
        bytes_accessed=int(2 * N * C * HWp * itemsize
                           + (C * C + C + 2 * K * K + K * HWp) * 4),
    )

    kernel = functools.partial(cbam_kernel, W=W, HW=HW, K=K)

    out_flat = pl.pallas_call(
        kernel,
        out_shape=jax.ShapeDtypeStruct((N, C, HWp), x.dtype),
        grid_spec=pltpu.PrefetchScalarGridSpec(
            num_scalar_prefetch=0,
            grid=(N,),
            in_specs=[
                pl.BlockSpec((1, C, HWp), lambda n: (n, 0, 0)),    # x
                pl.BlockSpec((C, C), lambda n: (0, 0)),            # w_fc
                pl.BlockSpec((C, 1), lambda n: (0, 0)),            # b_fc
                pl.BlockSpec((K, 2 * K), lambda n: (0, 0)),        # per-dw weights
                pl.BlockSpec((K, HWp), lambda n: (0, 0)),          # column masks
            ],
            out_specs=pl.BlockSpec((1, C, HWp), lambda n: (n, 0, 0)),
        ),
        compiler_params=pltpu.CompilerParams(
            dimension_semantics=("parallel",),
            vmem_limit_bytes=vmem_limit),
        cost_estimate=cost,
    )(x_flat, w_fc, b_fc, w_rows, mask)

    return out_flat[:, :, :HW].reshape(N, C, H, W)


def init_params(key, channels, kernel_size=7):
    k1, k2, k3 = jax.random.split(key, 3)
    scale = 0.2
    return {
        # ChannelAttention.fc: Conv2d(C, C, 1, bias=True)
        "w_fc": scale * jax.random.normal(k1, (channels, channels), jnp.float32),
        "b_fc": scale * jax.random.normal(k2, (channels,), jnp.float32),
        # SpatialAttention.cv1: Conv2d(2, 1, k, padding=k//2, bias=False)
        "w_sp": scale * jax.random.normal(
            k3, (2, kernel_size, kernel_size), jnp.float32),
    }


def cbam_reference(x, p):
    """Plain-JAX reference matching the PyTorch CBAM forward."""
    hp = jax.lax.Precision.HIGHEST
    pooled = jnp.mean(x, axis=(2, 3))                                   # (N, C)
    ca = jax.nn.sigmoid(
        jnp.einsum("ck,nk->nc", p["w_fc"], pooled, precision=hp)
        + p["b_fc"][None])                                              # (N, C)
    x1 = x * ca[:, :, None, None]
    avg_map = jnp.mean(x1, axis=1, keepdims=True)                       # (N,1,H,W)
    max_map = jnp.max(x1, axis=1, keepdims=True)                        # (N,1,H,W)
    maps = jnp.concatenate([avg_map, max_map], axis=1)                  # (N,2,H,W)
    K = p["w_sp"].shape[-1]
    pad = K // 2
    s = jax.lax.conv_general_dilated(
        maps, p["w_sp"][None],                                          # (1,2,K,K)
        window_strides=(1, 1), padding=((pad, pad), (pad, pad)),
        dimension_numbers=("NCHW", "OIHW", "NCHW"), precision=hp)
    return x1 * jax.nn.sigmoid(s)


if __name__ == "__main__":
    N, C, H, W = 2, 4, 16, 16
    key = jax.random.PRNGKey(0)
    kx, kp = jax.random.split(key)
    x = jax.random.normal(kx, (N, C, H, W), jnp.float32)
    params = init_params(kp, channels=C, kernel_size=7)

    out = jax.block_until_ready(cbam(x, params))
    ref = cbam_reference(x, params)

    assert out.shape == (N, C, H, W)
    max_err = float(jnp.max(jnp.abs(out - ref)))
    # Tolerance allows for reduced-precision MXU passes of the f32 pool / FC /
    # conv matmuls; real indexing, shift or mask bugs would be O(0.1 - 1).
    assert jnp.allclose(out, ref, atol=5e-3, rtol=5e-3), max_err
    print("KERNEL_OK")
</pallas_src>

<mosaic_0001>
module attributes {stable_mosaic.version = 11 : i64} {
  func.func @cbam_kernel(%arg0: i32, %arg1: memref<1x4x256xf32, #tpu.memory_space<vmem>>, %arg2: memref<4x4xf32, #tpu.memory_space<vmem>>, %arg3: memref<4x1xf32, #tpu.memory_space<vmem>>, %arg4: memref<7x14xf32, #tpu.memory_space<vmem>>, %arg5: memref<7x256xf32, #tpu.memory_space<vmem>>, %arg6: memref<1x4x256xf32, #tpu.memory_space<vmem>>) attributes {dimension_semantics = [#tpu.dimension_semantics<parallel>], iteration_bounds = array<i64: 2>, scalar_prefetch = 0 : i64, scratch_operands = 0 : i64, tpu.core_type = #tpu.core_type<tc>, window_params = [{transform_indices = @transform_0, window_bounds = array<i64: 1, 4, 256>}, {pipeline_mode = #tpu.pipeline_mode<synchronous>, transform_indices = @transform_1, window_bounds = array<i64: 4, 4>}, {pipeline_mode = #tpu.pipeline_mode<synchronous>, transform_indices = @transform_2, window_bounds = array<i64: 4, 1>}, {pipeline_mode = #tpu.pipeline_mode<synchronous>, transform_indices = @transform_3, window_bounds = array<i64: 7, 14>}, {pipeline_mode = #tpu.pipeline_mode<synchronous>, transform_indices = @transform_4, window_bounds = array<i64: 7, 256>}, {transform_indices = @transform_5, window_bounds = array<i64: 1, 4, 256>}]} {
    %c0 = arith.constant 0 : index
    %c0_0 = arith.constant 0 : index
    %c0_1 = arith.constant 0 : index
    %0 = vector.load %arg1[%c0, %c0_0, %c0_1] : memref<1x4x256xf32, #tpu.memory_space<vmem>>, vector<1x4x256xf32>
    %1 = vector.shape_cast %0 : vector<1x4x256xf32> to vector<4x256xf32>
    %cst = arith.constant 1.000000e+00 : f32
    %2 = vector.broadcast %cst : f32 to vector<256x1xf32>
    %cst_2 = arith.constant dense<0.000000e+00> : vector<4x1xf32>
    %3 = tpu.matmul %1, %2, %cst_2 {dimension_numbers = #tpu.dot_dimension_numbers<[1], [0], [0], [1], [0, 0, 1, 1], [], []>} : vector<4x256xf32>, vector<256x1xf32>, vector<4x1xf32> -> vector<4x1xf32>
    %cst_3 = arith.constant 3.906250e-03 : f32
    %4 = vector.broadcast %cst_3 : f32 to vector<4x1xf32>
    %5 = arith.mulf %3, %4 : vector<4x1xf32>
    %c0_4 = arith.constant 0 : index
    %c0_5 = arith.constant 0 : index
    %6 = vector.load %arg2[%c0_4, %c0_5] : memref<4x4xf32, #tpu.memory_space<vmem>>, vector<4x4xf32>
    %cst_6 = arith.constant dense<0.000000e+00> : vector<4x1xf32>
    %7 = tpu.matmul %6, %5, %cst_6 {dimension_numbers = #tpu.dot_dimension_numbers<[1], [0], [0], [1], [0, 0, 1, 1], [], []>} : vector<4x4xf32>, vector<4x1xf32>, vector<4x1xf32> -> vector<4x1xf32>
    %c0_7 = arith.constant 0 : index
    %c0_8 = arith.constant 0 : index
    %8 = vector.load %arg3[%c0_7, %c0_8] : memref<4x1xf32, #tpu.memory_space<vmem>>, vector<4x1xf32>
    %9 = arith.addf %7, %8 : vector<4x1xf32>
    %10 = arith.negf %9 : vector<4x1xf32>
    %11 = math.exp %10 : vector<4x1xf32>
    %cst_9 = arith.constant 1.000000e+00 : f32
    %12 = vector.broadcast %cst_9 : f32 to vector<4x1xf32>
    %13 = arith.addf %12, %11 : vector<4x1xf32>
    %14 = arith.divf %12, %13 : vector<4x1xf32>
    %15 = vector.broadcast %14 : vector<4x1xf32> to vector<4x256xf32>
    %16 = arith.mulf %1, %15 : vector<4x256xf32>
    %cst_10 = arith.constant 2.500000e-01 : f32
    %17 = vector.broadcast %cst_10 : f32 to vector<1x4xf32>
    %cst_11 = arith.constant dense<0.000000e+00> : vector<1x256xf32>
    %18 = tpu.matmul %17, %16, %cst_11 {dimension_numbers = #tpu.dot_dimension_numbers<[1], [0], [0], [1], [0, 0, 1, 1], [], []>} : vector<1x4xf32>, vector<4x256xf32>, vector<1x256xf32> -> vector<1x256xf32>
    %cst_12 = arith.constant dense<0xFF800000> : vector<256xf32>
    %19 = vector.multi_reduction <maximumf>, %16, %cst_12 [0] : vector<4x256xf32> to vector<256xf32>
    %20 = vector.shape_cast %19 : vector<256xf32> to vector<1x256xf32>
    %cst_13 = arith.constant 0.000000e+00 : f32
    %21 = vector.broadcast %cst_13 : f32 to vector<1x48xf32>
    %22 = tpu.concatenate %21, %18, %21 in 1 : vector<1x48xf32>, vector<1x256xf32>, vector<1x48xf32> -> vector<1x352xf32>
    %23 = tpu.concatenate %21, %20, %21 in 1 : vector<1x48xf32>, vector<1x256xf32>, vector<1x48xf32> -> vector<1x352xf32>
    %24 = vector.extract_strided_slice %22 {offsets = [0, 0], sizes = [1, 256], strides = [1, 1]} : vector<1x352xf32> to vector<1x256xf32>
    %25 = vector.extract_strided_slice %22 {offsets = [0, 16], sizes = [1, 256], strides = [1, 1]} : vector<1x352xf32> to vector<1x256xf32>
    %26 = vector.extract_strided_slice %22 {offsets = [0, 32], sizes = [1, 256], strides = [1, 1]} : vector<1x352xf32> to vector<1x256xf32>
    %27 = vector.extract_strided_slice %22 {offsets = [0, 48], sizes = [1, 256], strides = [1, 1]} : vector<1x352xf32> to vector<1x256xf32>
    %28 = vector.extract_strided_slice %22 {offsets = [0, 64], sizes = [1, 256], strides = [1, 1]} : vector<1x352xf32> to vector<1x256xf32>
    %29 = vector.extract_strided_slice %22 {offsets = [0, 80], sizes = [1, 256], strides = [1, 1]} : vector<1x352xf32> to vector<1x256xf32>
    %30 = vector.extract_strided_slice %22 {offsets = [0, 96], sizes = [1, 256], strides = [1, 1]} : vector<1x352xf32> to vector<1x256xf32>
    %31 = vector.extract_strided_slice %23 {offsets = [0, 0], sizes = [1, 256], strides = [1, 1]} : vector<1x352xf32> to vector<1x256xf32>
    %32 = vector.extract_strided_slice %23 {offsets = [0, 16], sizes = [1, 256], strides = [1, 1]} : vector<1x352xf32> to vector<1x256xf32>
    %33 = vector.extract_strided_slice %23 {offsets = [0, 32], sizes = [1, 256], strides = [1, 1]} : vector<1x352xf32> to vector<1x256xf32>
    %34 = vector.extract_strided_slice %23 {offsets = [0, 48], sizes = [1, 256], strides = [1, 1]} : vector<1x352xf32> to vector<1x256xf32>
    %35 = vector.extract_strided_slice %23 {offsets = [0, 64], sizes = [1, 256], strides = [1, 1]} : vector<1x352xf32> to vector<1x256xf32>
    %36 = vector.extract_strided_slice %23 {offsets = [0, 80], sizes = [1, 256], strides = [1, 1]} : vector<1x352xf32> to vector<1x256xf32>
    %37 = vector.extract_strided_slice %23 {offsets = [0, 96], sizes = [1, 256], strides = [1, 1]} : vector<1x352xf32> to vector<1x256xf32>
    %38 = tpu.concatenate %24, %25, %26, %27, %28, %29, %30, %31, %32, %33, %34, %35, %36, %37 in 0 : vector<1x256xf32>, vector<1x256xf32>, vector<1x256xf32>, vector<1x256xf32>, vector<1x256xf32>, vector<1x256xf32>, vector<1x256xf32>, vector<1x256xf32>, vector<1x256xf32>, vector<1x256xf32>, vector<1x256xf32>, vector<1x256xf32>, vector<1x256xf32>, vector<1x256xf32> -> vector<14x256xf32>
    %c0_14 = arith.constant 0 : index
    %c0_15 = arith.constant 0 : index
    %39 = vector.load %arg5[%c0_14, %c0_15] : memref<7x256xf32, #tpu.memory_space<vmem>>, vector<7x256xf32>
    %c0_16 = arith.constant 0 : index
    %c0_17 = arith.constant 0 : index
    %40 = vector.load %arg4[%c0_16, %c0_17] : memref<7x14xf32, #tpu.memory_space<vmem>>, vector<7x14xf32>
    %cst_18 = arith.constant 0.000000e+00 : f32
    %41 = vector.broadcast %cst_18 : f32 to vector<1x256xf32>
    %c3_i32 = arith.constant 3 : i32
    %42 = tpu.dynamic_rotate %38 by %c3_i32 dim 1 : vector<14x256xf32>, i32 -> vector<14x256xf32>
    %43 = vector.extract_strided_slice %40 {offsets = [0, 0], sizes = [1, 14], strides = [1, 1]} : vector<7x14xf32> to vector<1x14xf32>
    %cst_19 = arith.constant dense<0.000000e+00> : vector<1x256xf32>
    %44 = tpu.matmul %43, %42, %cst_19 {dimension_numbers = #tpu.dot_dimension_numbers<[1], [0], [0], [1], [0, 0, 1, 1], [], []>} : vector<1x14xf32>, vector<14x256xf32>, vector<1x256xf32> -> vector<1x256xf32>
    %45 = vector.extract_strided_slice %39 {offsets = [0, 0], sizes = [1, 256], strides = [1, 1]} : vector<7x256xf32> to vector<1x256xf32>
    %46 = arith.mulf %44, %45 : vector<1x256xf32>
    %47 = arith.addf %41, %46 : vector<1x256xf32>
    %c2_i32 = arith.constant 2 : i32
    %48 = tpu.dynamic_rotate %38 by %c2_i32 dim 1 : vector<14x256xf32>, i32 -> vector<14x256xf32>
    %49 = vector.extract_strided_slice %40 {offsets = [1, 0], sizes = [1, 14], strides = [1, 1]} : vector<7x14xf32> to vector<1x14xf32>
    %cst_20 = arith.constant dense<0.000000e+00> : vector<1x256xf32>
    %50 = tpu.matmul %49, %48, %cst_20 {dimension_numbers = #tpu.dot_dimension_numbers<[1], [0], [0], [1], [0, 0, 1, 1], [], []>} : vector<1x14xf32>, vector<14x256xf32>, vector<1x256xf32> -> vector<1x256xf32>
    %51 = vector.extract_strided_slice %39 {offsets = [1, 0], sizes = [1, 256], strides = [1, 1]} : vector<7x256xf32> to vector<1x256xf32>
    %52 = arith.mulf %50, %51 : vector<1x256xf32>
    %53 = arith.addf %47, %52 : vector<1x256xf32>
    %c1_i32 = arith.constant 1 : i32
    %54 = tpu.dynamic_rotate %38 by %c1_i32 dim 1 : vector<14x256xf32>, i32 -> vector<14x256xf32>
    %55 = vector.extract_strided_slice %40 {offsets = [2, 0], sizes = [1, 14], strides = [1, 1]} : vector<7x14xf32> to vector<1x14xf32>
    %cst_21 = arith.constant dense<0.000000e+00> : vector<1x256xf32>
    %56 = tpu.matmul %55, %54, %cst_21 {dimension_numbers = #tpu.dot_dimension_numbers<[1], [0], [0], [1], [0, 0, 1, 1], [], []>} : vector<1x14xf32>, vector<14x256xf32>, vector<1x256xf32> -> vector<1x256xf32>
    %57 = vector.extract_strided_slice %39 {offsets = [2, 0], sizes = [1, 256], strides = [1, 1]} : vector<7x256xf32> to vector<1x256xf32>
    %58 = arith.mulf %56, %57 : vector<1x256xf32>
    %59 = arith.addf %53, %58 : vector<1x256xf32>
    %60 = vector.extract_strided_slice %40 {offsets = [3, 0], sizes = [1, 14], strides = [1, 1]} : vector<7x14xf32> to vector<1x14xf32>
    %cst_22 = arith.constant dense<0.000000e+00> : vector<1x256xf32>
    %61 = tpu.matmul %60, %38, %cst_22 {dimension_numbers = #tpu.dot_dimension_numbers<[1], [0], [0], [1], [0, 0, 1, 1], [], []>} : vector<1x14xf32>, vector<14x256xf32>, vector<1x256xf32> -> vector<1x256xf32>
    %62 = vector.extract_strided_slice %39 {offsets = [3, 0], sizes = [1, 256], strides = [1, 1]} : vector<7x256xf32> to vector<1x256xf32>
    %63 = arith.mulf %61, %62 : vector<1x256xf32>
    %64 = arith.addf %59, %63 : vector<1x256xf32>
    %c255_i32 = arith.constant 255 : i32
    %65 = tpu.dynamic_rotate %38 by %c255_i32 dim 1 : vector<14x256xf32>, i32 -> vector<14x256xf32>
    %66 = vector.extract_strided_slice %40 {offsets = [4, 0], sizes = [1, 14], strides = [1, 1]} : vector<7x14xf32> to vector<1x14xf32>
    %cst_23 = arith.constant dense<0.000000e+00> : vector<1x256xf32>
    %67 = tpu.matmul %66, %65, %cst_23 {dimension_numbers = #tpu.dot_dimension_numbers<[1], [0], [0], [1], [0, 0, 1, 1], [], []>} : vector<1x14xf32>, vector<14x256xf32>, vector<1x256xf32> -> vector<1x256xf32>
    %68 = vector.extract_strided_slice %39 {offsets = [4, 0], sizes = [1, 256], strides = [1, 1]} : vector<7x256xf32> to vector<1x256xf32>
    %69 = arith.mulf %67, %68 : vector<1x256xf32>
    %70 = arith.addf %64, %69 : vector<1x256xf32>
    %c254_i32 = arith.constant 254 : i32
    %71 = tpu.dynamic_rotate %38 by %c254_i32 dim 1 : vector<14x256xf32>, i32 -> vector<14x256xf32>
    %72 = vector.extract_strided_slice %40 {offsets = [5, 0], sizes = [1, 14], strides = [1, 1]} : vector<7x14xf32> to vector<1x14xf32>
    %cst_24 = arith.constant dense<0.000000e+00> : vector<1x256xf32>
    %73 = tpu.matmul %72, %71, %cst_24 {dimension_numbers = #tpu.dot_dimension_numbers<[1], [0], [0], [1], [0, 0, 1, 1], [], []>} : vector<1x14xf32>, vector<14x256xf32>, vector<1x256xf32> -> vector<1x256xf32>
    %74 = vector.extract_strided_slice %39 {offsets = [5, 0], sizes = [1, 256], strides = [1, 1]} : vector<7x256xf32> to vector<1x256xf32>
    %75 = arith.mulf %73, %74 : vector<1x256xf32>
    %76 = arith.addf %70, %75 : vector<1x256xf32>
    %c253_i32 = arith.constant 253 : i32
    %77 = tpu.dynamic_rotate %38 by %c253_i32 dim 1 : vector<14x256xf32>, i32 -> vector<14x256xf32>
    %78 = vector.extract_strided_slice %40 {offsets = [6, 0], sizes = [1, 14], strides = [1, 1]} : vector<7x14xf32> to vector<1x14xf32>
    %cst_25 = arith.constant dense<0.000000e+00> : vector<1x256xf32>
    %79 = tpu.matmul %78, %77, %cst_25 {dimension_numbers = #tpu.dot_dimension_numbers<[1], [0], [0], [1], [0, 0, 1, 1], [], []>} : vector<1x14xf32>, vector<14x256xf32>, vector<1x256xf32> -> vector<1x256xf32>
    %80 = vector.extract_strided_slice %39 {offsets = [6, 0], sizes = [1, 256], strides = [1, 1]} : vector<7x256xf32> to vector<1x256xf32>
    %81 = arith.mulf %79, %80 : vector<1x256xf32>
    %82 = arith.addf %76, %81 : vector<1x256xf32>
    %83 = arith.negf %82 : vector<1x256xf32>
    %84 = math.exp %83 : vector<1x256xf32>
    %cst_26 = arith.constant 1.000000e+00 : f32
    %85 = vector.broadcast %cst_26 : f32 to vector<1x256xf32>
    %86 = arith.addf %85, %84 : vector<1x256xf32>
    %87 = arith.divf %85, %86 : vector<1x256xf32>
    %88 = vector.broadcast %87 : vector<1x256xf32> to vector<4x256xf32>
    %89 = arith.mulf %16, %88 : vector<4x256xf32>
    %c0_27 = arith.constant 0 : index
    %c0_28 = arith.constant 0 : index
    %c0_29 = arith.constant 0 : index
    %90 = vector.load %arg6[%c0_27, %c0_28, %c0_29] : memref<1x4x256xf32, #tpu.memory_space<vmem>>, vector<1x4x256xf32>
    %91 = vector.shape_cast %90 : vector<1x4x256xf32> to vector<4x256xf32>
    %92 = vector.shape_cast %89 : vector<4x256xf32> to vector<1x4x256xf32>
    tpu.vector_store %arg6[%c0_27, %c0_28, %c0_29], %92 {strides = array<i32>} : memref<1x4x256xf32, #tpu.memory_space<vmem>>, vector<1x4x256xf32>,
    return
  }
  func.func @transform_0(%arg0: i32) -> (i32, i32, i32) {
    %c0_i32 = arith.constant 0 : i32
    %c0_i32_0 = arith.constant 0 : i32
    %c0_i32_1 = arith.constant 0 : i32
    return %arg0, %c0_i32, %c0_i32_0 : i32, i32, i32
  }
  func.func @transform_1(%arg0: i32) -> (i32, i32) {
    %c0_i32 = arith.constant 0 : i32
    %c0_i32_0 = arith.constant 0 : i32
    %c0_i32_1 = arith.constant 0 : i32
    return %c0_i32, %c0_i32_0 : i32, i32
  }
  func.func @transform_2(%arg0: i32) -> (i32, i32) {
    %c0_i32 = arith.constant 0 : i32
    %c0_i32_0 = arith.constant 0 : i32
    %c0_i32_1 = arith.constant 0 : i32
    return %c0_i32, %c0_i32_0 : i32, i32
  }
  func.func @transform_3(%arg0: i32) -> (i32, i32) {
    %c0_i32 = arith.constant 0 : i32
    %c0_i32_0 = arith.constant 0 : i32
    %c0_i32_1 = arith.constant 0 : i32
    return %c0_i32, %c0_i32_0 : i32, i32
  }
  func.func @transform_4(%arg0: i32) -> (i32, i32) {
    %c0_i32 = arith.constant 0 : i32
    %c0_i32_0 = arith.constant 0 : i32
    %c0_i32_1 = arith.constant 0 : i32
    return %c0_i32, %c0_i32_0 : i32, i32
  }
  func.func @transform_5(%arg0: i32) -> (i32, i32, i32) {
    %c0_i32 = arith.constant 0 : i32
    %c0_i32_0 = arith.constant 0 : i32
    %c0_i32_1 = arith.constant 0 : i32
    return %arg0, %c0_i32, %c0_i32_0 : i32, i32, i32
  }
}

</mosaic_0001>

<bundles_post_ra>
// kernel: tpu_custom_call.1
= control target key start
LH: loop header
LB: loop body
LE: loop exit
PB: predicated region body
PF: predicated region fallthrough
CT: control target
= control target key end

     0   :  { %10 = vsyncpa [#allocation3], 0  ;;  %s2165_s0 = inlined_call_operand.hbm [shape: f32[2,4,256], index: 0, kind: input, shape index: {}]   ;;  %s2166_s1 = inlined_call_operand.vmem [shape: f32[4,4], index: 1, kind: input, shape index: {}]   ;;  %s2167_s2 = inlined_call_operand.vmem [shape: f32[4,1], index: 2, kind: input, shape index: {}]   ;;  %s2168_s3 = inlined_call_operand.hbm [shape: f32[7,14], index: 3, kind: input, shape index: {}]   ;;  %s2169_s4 = inlined_call_operand.hbm [shape: f32[7,256], index: 4, kind: input, shape index: {}]   ;;  %s2170_s5 = inlined_call_operand.hbm [shape: f32[2,4,256], index: 5, kind: output, shape index: {}]  }
   0x1   :  { %12 = vsyncpa [#allocation3 + $0x1], 0 }
   0x2   :  { %13 = vsyncpa [#allocation6], 0 }
   0x3   :  { %14 = vsyncpa [#allocation4], 0 }
   0x4   :  { %16 = vsyncpa [#allocation4 + $0x1], 0  ;;  %s1731_s18 = smov 0   ;;  %s1733_s19 = smov 0  }
   0x5   :  { %s1735_s20 = smov 0   ;;  %s1737_s21 = smov 0  }
   0x6 LB: > { %s1752_s22 = sadd.s32 4294967295, %s1681_s21   ;;  %s1303_s23 = sadd.s32 4294967294, %s1681_s21   ;;  %s1681_s21 = sphi %s1737_s21, %s2180_s21   ;;  %s1677_s20 = sphi %s1735_s20, %s2179_s20   ;;  %s1673_s19 = sphi %s1733_s19, %s2178_s19   ;;  %s1669_s18 = sphi %s1731_s18, %s2177_s18  }
   0x7   : > { %p42_p0 = scmp.ne.s32.totalorder %s1673_s19, %s1669_s18  ;;  %p43_p1 = scmp.eq.s32.totalorder %s1752_s22, 0 }
   0x8   : > { %p150_p2 = scmp.eq.s32.totalorder %s1752_s22, 1  ;;  %p156_p3 = scmp.eq.s32.totalorder %s1303_s23, 1 }
   0x9   : > { %p1761_p4 = por %p43_p1, %p42_p0  ;;  %p1304_p5 = scmp.ge.s32.totalorder %s1681_s21, 1 }
   0xa   : > { %p1766_p6 = por %p156_p3, %p42_p0  ;;  %p163_p7 = scmp.lt.s32.totalorder %s1681_s21, 3 }
   0xb   : > { %s181_s28 = sshll.u32 %s2168_s3, 4  ;;  %s1683_s30 = smov [#allocation5]   ;;  %s182_s28 = int_to_ptr.hbm [resolvable:$true] %s181_s28 }
   0xc   : > { %p1774_p8 = pnand %p1304_p5, %p163_p7  ;;  %s183_s6 = sshll.u32 %s1683_s30, 4  ;;  %s184_s6 = int_to_ptr.vmem [resolvable:$true] %s183_s6 }
   0xd   : > { %s193_s9 = sshll.u32 %s2169_s4, 4  ;;  %s1684_s10 = smov [#allocation7]   ;;  %s194_s9 = int_to_ptr.hbm [resolvable:$true] %s193_s9 }
   0xe   : > { %p1372_p10 = pneg %p1774_p8  ;;  %s195_s11 = sshll.u32 %s1684_s10, 4  ;;  %s196_s11 = int_to_ptr.vmem [resolvable:$true] %s195_s11 }
   0xf   : > { %s1787_s12 = sadd.s32 1, %s1681_s21   ;;  %s29_s13 = sadd.s32 1, %s1677_s20 }
  0x10   : > { %p1373_p11 = pnand %p1372_p10, %p43_p1  ;;  %s26_s14 = ssub.s32 %s1681_s21, %s1787_s12 }
  0x11   : > { %p36_p12 = scmp.ne.s32.totalorder %s1677_s20, %s1673_s19  ;;  %p27_p13 = scmp.eq.s32.totalorder %s26_s14, 0 }
  0x12   : > { %1375 = dma.hbm_to_vmem [thread:$0]  (!%p1373_p11), %s182_s28, 128, %s184_s6, [#allocation6]  }
  0x13   : > { %1378 = dma.hbm_to_vmem [thread:$0]  (!%p1373_p11), %s194_s9, 256, %s196_s11, [#allocation6]  }
  0x14   : > { %p37_p0 = scmp.eq.s32.totalorder %s1681_s21, 0  ;;  %p1797_p3 = por %p150_p2, %p36_p12 }
  0x15   : > { %p1389_p5 = scmp.lt.s32.totalorder %s1681_s21, 2  ;;  %s206_s17 = sand.u32 1, %s1677_s20  }
  0x16   : > { %s1803_s16 = scalar_select %p27_p13, %s1677_s20, %s29_s13  }
  0x17   : > { %p38_p7 = por %p37_p0, %p36_p12  ;;  %s1308_s23 = sshll.u32 %s206_s17, 3 }
  0x18   : > { %s1358_s26 = sshll.u32 %s1681_s21, 3  ;;  %s210_s6 = scalar_lea.vmem [#allocation2], %s1308_s23 }
  0x19   : > { %s215_s30 = scalar_lea.hbm %s2165_s0, %s1358_s26  ;;  %s219_s7 = sshll.u32 %s210_s6, 4  ;;  %s220_s7 = int_to_ptr.vmem [resolvable:$true] %s219_s7 }
  0x1a   : > { %s217_s8 = sshll.u32 %s215_s30, 4  ;;  %p1810_p2 = pnand %p1389_p5, %p38_p7  ;;  %s218_s8 = int_to_ptr.hbm [resolvable:$true] %s217_s8 }
  0x1b   : > { %s207_s10 = scalar_lea.sflag [#allocation3], %s206_s17  ;;  %s1581_s11 = sshra.s32 %s218_s8, 4  ;;  %s1582_s11 = int_to_ptr.hbm [resolvable:$true] %s1581_s11 }
  0x1c   : > { %s1583_s13 = scalar_lea.hbm %s1582_s11, 8  ;;  %p1585_p11 = pneg %p1810_p2 }
  0x1d   : > { %p1584_p10 = scmp.ne.s32.totalorder %s1582_s11, %s1583_s13  ;;  %s1588_s26 = scalar_lea.hbm %s2165_s0, 16 }
  0x1e   : > { %p1589_p0 = scmp.lt.s32.totalorder %s1582_s11, %s2165_s0  ;;  %p1590_p5 = scmp.lt.s32.totalorder %s1588_s26, %s1583_s13 }
  0x1f   : > { %p1586_p12 = pnand %p1585_p11, %p1584_p10 }
  0x20   : > { %p1591_p7 = por %p1590_p5, %p1589_p0 }
  0x21   : > { %p1587_p13 = pneg %p1586_p12 }
  0x23   : > { %p1592_p9 = pnand %p1591_p7, %p1587_p13 }
  0x25   : > { %1595 = shalt.err (!%p1592_p9)
}
  0x26   : > { %1382 = dma.hbm_to_vmem [thread:$0]  (!%p1810_p2), %s218_s8, 128, %s220_s7, %s207_s10  }
  0x27   : > { %228 = sbr.rel (%p1774_p8) target bundleno = 1226 (0x4ca), region = 40  ;;  %s1827_s17 = sand.u32 (!%p1774_p8), 1, %s1673_s19  }
  0x28   : > { %s1312_s30 = sshll.u32 (!%p1774_p8), %s1827_s17, 3  ;;  %s231_s6 = scalar_lea.sflag (!%p1774_p8), [#allocation3], %s1827_s17 }
  0x29   : > { %s234_s11 = scalar_lea.vmem (!%p1774_p8), [#allocation2], %s1312_s30 }
  0x2c   : > { %1656 = dma.done.wait (%p1761_p4), %s231_s6, 128  }
  0x2d   : > { %1658 = vsyncadd (%p1761_p4), %s231_s6, 4294967168 }
  0x2e   : > { %1660 = dma.done.wait (%p43_p1), [#allocation6], 384  }
  0x2f   : > { %1662 = vsyncadd (%p43_p1), [#allocation6], 4294966912  ;;  %v1685_v0 = vmov 1.0   ;;  %v1841_v1 = vld [vmem:[%s234_s11] sm:$0xff]  ;;  %vm326_vm0 = vcmask 1043456   ;;  %vm322_vm1 = vcmask 31744  }
  0x30   : > { %279 = vmatpush.msra.mxu0 %v1685_v0  ;;  %299 = vmatpush.msra.mxu1 %v1685_v0  ;;  %274 = vst [vmem:[#allocation1] ss:$2 sm:$0xff] %v1841_v1  ;;  %v320_v8 = vld [vmem:[%s2166_s1] sm:$0xf]  ;;  %v1686_v9 = vmov 0   ;;  %v1688_v34 = vmov 0.25  }
  0x31   : > { %1443 = vset.pattern.permute.xlu0 %v1686_v9  ;;  %v321_v10 = vld [vmem:[%s2167_s2] sm:$0xf]  ;;  %v1687_v26 = vmov 839922192   ;;  %s1689_s9 = smov 48   ;;  %vm455_vm6 = vcmask 392192  }
  0x32   : > { %280 = vmatpush.msra.mxu0 %v1685_v0  ;;  %300 = vmatpush.msra.mxu1 %v1685_v0  ;;  %v374_v27 = vunpack.c.l.s4 %v1687_v26  ;;  %s1690_s10 = smov 112   ;;  %s1691_s13 = smov 96   ;;  %vm484_vm7 = vcmask 916480   ;;  %vm498_vm8 = vcmask 785408   ;;  %vm639_vm9 = vcmask 1040384  }
  0x33   : > { %s1692_s14 = smov 80   ;;  %s1693_s23 = smov 64   ;;  %vm512_vm10 = vcmask 654336   ;;  %vm642_vm11 = vcmask 1041408   ;;  %vm526_vm12 = vcmask 523264   ;;  %vm645_vm13 = vcmask 1042432  }
  0x34   : > { %281 = vmatpush.msra.mxu0 %v1685_v0  ;;  %301 = vmatpush.msra.mxu1 %v1685_v0  ;;  %v375_v28 = vunpack.c.0.s8 %v374_v27  ;;  %s1694_s26 = smov 32   ;;  %vm553_vm14 = vcmask 261120   ;;  %vm650_vm15 = vcmask 1044480   ;;  %s1695_s27 = smov 3  }
  0x35   : > { %s1696_s28 = smov 125   ;;  %s1697_s6 = smov 2  }
  0x36   : > { %282 = vmatpush.msra.mxu0 %v1685_v0  ;;  %302 = vmatpush.msra.mxu1 %v1685_v0  ;;  %s1698_s11 = smov 1   ;;  %s1699_s24 = smov 127  }
  0x37   : > { %v275_v2 = vld.sshfl [vmem:[#allocation1] sm:$0xff pattern:$0x75316420]  ;;  %v276_v3 = vld.sshfl [vmem:[#allocation1 + $0x8] sm:$0xff pattern:$0x75316420] }
  0x38   : > { %283 = vmatpush.msra.mxu0 %v1685_v0  ;;  %303 = vmatpush.msra.mxu1 %v1685_v0  ;;  %s1700_s29 = smov 126   ;;  %s1359_s7 = sshll.u32 %s1752_s22, 3 }
  0x39   : > { %s271_s22 = scalar_lea.vmem [#allocation8], %s1312_s30  ;;  %s1631_s30 = scalar_lea.hbm %s2170_s5, 16 }
  0x3a   : > { %284 = vmatpush.msra.mxu0 %v1685_v0  ;;  %304 = vmatpush.msra.mxu1 %v1685_v0 }
  0x3c   : > { %285 = vmatpush.msra.mxu0 %v1685_v0  ;;  %305 = vmatpush.msra.mxu1 %v1685_v0 }
  0x3e   : > { %286 = vmatpush.msra.mxu0 %v1685_v0  ;;  %306 = vmatpush.msra.mxu1 %v1685_v0 }
  0x40   : > { %287 = vmatpush.msra.mxu0 %v1685_v0  ;;  %307 = vmatpush.msra.mxu1 %v1685_v0 }
  0x42   : > { %288 = vmatpush.msra.mxu0 %v1685_v0  ;;  %308 = vmatpush.msra.mxu1 %v1685_v0 }
  0x44   : > { %289 = vmatpush.msra.mxu0 %v1685_v0  ;;  %309 = vmatpush.msra.mxu1 %v1685_v0 }
  0x46   : > { %290 = vmatpush.msra.mxu0 %v1685_v0  ;;  %310 = vmatpush.msra.mxu1 %v1685_v0 }
  0x48   : > { %291 = vmatpush.msra.mxu0 %v1685_v0  ;;  %311 = vmatpush.msra.mxu1 %v1685_v0 }
  0x4a   : > { %292 = vmatpush.msra.mxu0 %v1685_v0  ;;  %312 = vmatpush.msra.mxu1 %v1685_v0 }
  0x4c   : > { %293 = vmatpush.msra.mxu0 %v1685_v0  ;;  %313 = vmatpush.msra.mxu1 %v1685_v0 }
  0x4e   : > { %294 = vmatpush.msra.mxu0 %v1685_v0  ;;  %314 = vmatpush.msra.mxu1 %v1685_v0 }
  0x4f   : > { %295 = vmatmul.f32.vlgmr.msra.gmra.mxu0 %v275_v2  ;;  %315 = vmatmul.f32.vlgmr.msra.gmra.mxu1 %v276_v3 }
  0xcc   : > { %v296_v4 = vpop.f32.mrf.mxu0  ;;  %v316_v5 = vpop.f32.mrf.mxu1 }
  0xcd   : > { %v317_v6 = vadd.f32 %v316_v5, %v296_v4 }
  0xcf   : > { %v319_v7 = vmul.f32 0.00390625, %v317_v6 }
  0xd1   : > { %1316 = vmatpush.msk.msra.mxu2 %vm326_vm0, %v319_v7 }
  0xd2   : > { %1317 = vmatmul.msk.f32.vlgmr.msra.gmra.mxu2 %vm322_vm1, %v320_v8 }
 0x155   : > { %v347_v11 = vpop.f32.mrf.mxu2 }
 0x156   : > { %v348_v12 = vadd.f32 %v347_v11, %v321_v10 }
 0x158   : > { %v1318_v13 = vmul.f32 -1.442695, %v348_v12 }
 0x15a   : > { %1509 = vpow2.f32 %v1318_v13 }
 0x160   : > { %v1510_v14 = vpop.eup %1509 }
 0x161   : > { %v353_v15 = vadd.f32 1.0, %v1510_v14 }
 0x163   : > { %1511 = vrcp.f32 %v353_v15  ;;  %v365_v19 = vand.u32 2147483648, %v353_v15  ;;  %v363_v21 = vand.u32 2147483647, %v353_v15  ;;  %vm359_vm3 = vweird.f32 %v353_v15 }
 0x165   : > { %v366_v23 = vor.u32 1.1754944e-38, %v365_v19  ;;  %vm364_vm5 = vcmp.eq.f32.partialorder %v363_v21, 8.507059e+37 }
 0x169   : > { %v1512_v16 = vpop.eup %1511 }
 0x16a   : > { %v355_v17 = vmul.f32 %v1512_v16, %v353_v15  ;;  %vm360_vm2 = vweird.f32 %v1512_v16 }
 0x16b   : > { %vm361_vm4 = vmor %vm359_vm3, %vm360_vm2  ;;  %vm656_vm2 = vcmask 1046528  }
 0x16c   : > { %v356_v18 = vsub.f32 1.0, %v355_v17 }
 0x16e   : > { %v357_v20 = vmul.f32 %v1512_v16, %v356_v18 }
 0x170   : > { %v358_v22 = vadd.f32 %v1512_v16, %v357_v20 }
 0x172   : > { %v362_v24 = vsel %vm361_vm4, %v1512_v16, %v358_v22 }
 0x173   : > { %v367_v25 = vsel %vm364_vm5, %v366_v23, %v362_v24  ;;  %vm687_vm5 = vcmask 113664  }
 0x174   : > { %371 = vperm.xlu0 %1443, %v367_v25  }
 0x1e6   : > { %v372_v29 = vpop.permute.xlu0 %371 }
 0x1e7   : > { %v376_v30 = vperm.slane %v372_v29, %v375_v28 }
 0x1e9   : > { %v1853_v31 = vmul.f32 %v376_v30, %v1841_v1 }
 0x1eb   : > { %380 = vst [vmem:[#allocation1] ss:$2 sm:$0xff] %v1853_v31 }
 0x1f2   : > { %v381_v32 = vld.sshfl [vmem:[#allocation1] sm:$0xff pattern:$0x75316420]  ;;  %v382_v33 = vld.sshfl [vmem:[#allocation1 + $0x8] sm:$0xff pattern:$0x75316420] }
 0x1f3   : > { %1319 = vmatpush.msk.msra.mxu3 %vm326_vm0, %v381_v32  ;;  %1321 = vmatpush.msk.msrb.mxu2 %vm326_vm0, %v382_v33  ;;  %430 = vst [vmem:[#allocation1] ss:$2 sm:$0xff] %v1853_v31 }
 0x1f4   : > { %1320 = vmatmul.msk.f32.vlgmr.msra.gmra.mxu3 %vm322_vm1, %v1688_v34  ;;  %1322 = vmatmul.msk.f32.vlgmr.msrb.gmra.mxu2 %vm322_vm1, %v1688_v34  ;;  %vm653_vm1 = vcmask 1045504  }
 0x1fa   : > { %v431_v35 = vld.sshfl [vmem:[#allocation1] sm:$0xff pattern:$0x75316420]  ;;  %v432_v36 = vld.sshfl [vmem:[#allocation1 + $0x8] sm:$0xff pattern:$0x75316420] }
 0x1fb   : > { %v435_v37 = vsel %vm326_vm0, %v431_v35, -inf  ;;  %v442_v38 = vsel %vm326_vm0, %v432_v36, -inf }
 0x1fc   : > { %v436_v39 = vrot.slane %v435_v37, 4  ;;  %v443_v40 = vrot.slane %v442_v38, 4 }
 0x1fe   : > { %v437_v41 = vmax.f32 %v435_v37, %v436_v39  ;;  %v444_v42 = vmax.f32 %v442_v38, %v443_v40 }
 0x200   : > { %v438_v43 = vrot.slane %v437_v41, 2  ;;  %v445_v45 = vrot.slane %v444_v42, 2 }
 0x202   : > { %v439_v44 = vmax.f32 %v437_v41, %v438_v43  ;;  %v446_v48 = vmax.f32 %v444_v42, %v445_v45 }
 0x204   : > { %v440_v46 = vrot.slane %v439_v44, 1  ;;  %v447_v49 = vrot.slane %v446_v48, 1 }
 0x206   : > { %v441_v47 = vmax.f32 %v439_v44, %v440_v46  ;;  %v448_v50 = vmax.f32 %v446_v48, %v447_v49 }
 0x208   : > { %464 = vrot.lane.b32.xlu1 %v441_v47, %s1689_s9 }
 0x210   : > { %466 = vrot.lane.b32.xlu1 %v448_v50, %s1689_s9 }
 0x277   : > { %v407_v51 = vpop.f32.mrf.mxu3  ;;  %v427_v52 = vpop.f32.mrf.mxu2 }
 0x278   : > { %v1444_v53 = vpack.i.bf16 %v427_v52, %v407_v51 }
 0x27a   : > { %v465_v54 = vpop.permute.xlu1 %464  ;;  %1445 = vrot.lane.b32.xlu0 %v1444_v53, %s1689_s9 }
 0x27b   : > { %v1867_v55 = vsel %vm455_vm6, 0.0, %v465_v54 }
 0x27c   : > { %v574_v59 = vrot.slane %v1867_v55, 7  ;;  %v587_v63 = vrot.slane %v1867_v55, 6  ;;  %v600_v3 = vrot.slane %v1867_v55, 5  ;;  %v613_v4 = vrot.slane %v1867_v55, 4 }
 0x27d   : > { %v626_v8 = vrot.slane %v1867_v55, 3 }
 0x282   : > { %v467_v56 = vpop.permute.xlu1 %466  ;;  %564 = vrot.lane.b32.xlu0 %v1867_v55, %s1690_s10 }
 0x283   : > { %v1872_v57 = vsel %vm455_vm6, %v465_v54, %v467_v56  ;;  %v1875_v58 = vsel %vm455_vm6, %v467_v56, 0.0 }
 0x284   : > { %568 = vrot.lane.b32.xlu2 %v1875_v58, %s1690_s10  ;;  %566 = vrot.lane.b32.xlu1 %v1872_v57, %s1690_s10  ;;  %v576_v60 = vrot.slane %v1875_v58, 7  ;;  %v575_v61 = vrot.slane %v1872_v57, 7  ;;  %v588_v62 = vrot.slane %v1872_v57, 6  ;;  %v589_v0 = vrot.slane %v1875_v58, 6 }
 0x285   : > { %v602_v1 = vrot.slane %v1875_v58, 5  ;;  %v601_v2 = vrot.slane %v1872_v57, 5  ;;  %v615_v5 = vrot.slane %v1875_v58, 4  ;;  %v614_v6 = vrot.slane %v1872_v57, 4 }
 0x286   : > { %v627_v7 = vrot.slane %v1872_v57, 3  ;;  %v628_v50 = vrot.slane %v1875_v58, 3 }
 0x28a   : > { %577 = vrot.lane.b32.xlu0 %v574_v59, %s1691_s13 }
 0x28c   : > { %581 = vrot.lane.b32.xlu2 %v576_v60, %s1691_s13  ;;  %579 = vrot.lane.b32.xlu1 %v575_v61, %s1691_s13 }
 0x292   : > { %592 = vrot.lane.b32.xlu0 %v588_v62, %s1692_s14 }
 0x294   : > { %590 = vrot.lane.b32.xlu2 %v587_v63, %s1692_s14  ;;  %594 = vrot.lane.b32.xlu1 %v589_v0, %s1692_s14 }
 0x29a   : > { %607 = vrot.lane.b32.xlu0 %v602_v1, %s1693_s23 }
 0x29c   : > { %605 = vrot.lane.b32.xlu2 %v601_v2, %s1693_s23  ;;  %603 = vrot.lane.b32.xlu1 %v600_v3, %s1693_s23 }
 0x2a2   : > { %616 = vrot.lane.b32.xlu0 %v613_v4, %s1689_s9 }
 0x2a4   : > { %620 = vrot.lane.b32.xlu2 %v615_v5, %s1689_s9  ;;  %618 = vrot.lane.b32.xlu1 %v614_v6, %s1689_s9 }
 0x2aa   : > { %631 = vrot.lane.b32.xlu0 %v627_v7, %s1694_s26 }
 0x2ac   : > { %629 = vrot.lane.b32.xlu2 %v626_v8, %s1694_s26 }
 0x2de   : > { %v569_v9 = vpop.permute.xlu2 %568 }
 0x2e6   : > { %v582_v23 = vpop.permute.xlu2 %581 }
 0x2ec   : > { %v1446_v10 = vpop.permute.xlu0 %1445 }
 0x2ed   : > { %v1448_v11 = vunpack.i.h.bf16 %v1446_v10  ;;  %v1447_v12 = vunpack.i.l.bf16 %v1446_v10 }
 0x2ee   : > { %v591_v34 = vpop.permute.xlu2 %590 }
 0x2ef   : > { %v461_v13 = vsel %vm455_vm6, %v1448_v11, 0.0  ;;  %v1911_v14 = vsel %vm455_vm6, %v1447_v12, %v1448_v11  ;;  %v1914_v15 = vsel %vm455_vm6, 0.0, %v1447_v12 }
 0x2f0   : > { %v491_v16 = vrot.slane %v461_v13, 6  ;;  %v489_v17 = vrot.slane %v1914_v15, 6  ;;  %v490_v18 = vrot.slane %v1911_v14, 6  ;;  %v475_v19 = vrot.slane %v1914_v15, 7 }
 0x2f1   : > { %v476_v20 = vrot.slane %v1911_v14, 7  ;;  %v517_v25 = vrot.slane %v1914_v15, 4  ;;  %v518_v26 = vrot.slane %v1911_v14, 4  ;;  %v505_v30 = vrot.slane %v461_v13, 5 }
 0x2f2   : > { %496 = vrot.lane.b32.xlu1 %v491_v16, %s1691_s13  ;;  %v1454_v21 = vpack.i.bf16 %v490_v18, %v489_v17  ;;  %v477_v32 = vrot.slane %v461_v13, 7  ;;  %v531_v36 = vrot.slane %v1914_v15, 3  ;;  %v532_v37 = vrot.slane %v1911_v14, 3 }
 0x2f3   : > { %v1449_v22 = vpack.i.bf16 %v476_v20, %v475_v19  ;;  %v1464_v29 = vpack.i.bf16 %v518_v26, %v517_v25  ;;  %v503_v39 = vrot.slane %v1914_v15, 5  ;;  %v504_v40 = vrot.slane %v1911_v14, 5 }
 0x2f4   : > { %v565_v24 = vpop.permute.xlu0 %564  ;;  %1455 = vrot.lane.b32.xlu0 %v1454_v21, %s1691_s13  ;;  %v533_v42 = vrot.slane %v461_v13, 3  ;;  %v1469_v43 = vpack.i.bf16 %v532_v37, %v531_v36  ;;  %v546_v51 = vrot.slane %v461_v13, 2  ;;  %v519_v52 = vrot.slane %v461_v13, 4  ;;  %s1211_s13 = sshll.u32 %s271_s22, 4  ;;  %s1212_s13 = int_to_ptr.vmem [resolvable:$true] %s1211_s13 }
 0x2f5   : > { %1450 = vrot.lane.b32.xlu2 %v1449_v22, %s1690_s10  ;;  %v1459_v44 = vpack.i.bf16 %v504_v40, %v503_v39  ;;  %v544_v60 = vrot.slane %v1914_v15, 2  ;;  %v545_v58 = vrot.slane %v1911_v14, 2 }
 0x2f6   : > { %v567_v27 = vpop.permute.xlu1 %566  ;;  %v606_v48 = vpop.permute.xlu2 %605 }
 0x2f7   : > { %v571_v28 = vsel %vm484_vm7, %v567_v27, %v569_v9  ;;  %v1474_v62 = vpack.i.bf16 %v545_v58, %v544_v60  ;;  %v570_v5 = vsel %vm484_vm7, %v565_v24, %v567_v27 }
 0x2fa   : > { %1465 = vrot.lane.b32.xlu1 %v1464_v29, %s1693_s23 }
 0x2fc   : > { %v578_v33 = vpop.permute.xlu0 %577  ;;  %510 = vrot.lane.b32.xlu0 %v505_v30, %s1692_s14 }
 0x2fd   : > { %482 = vrot.lane.b32.xlu2 %v477_v32, %s1690_s10  ;;  %s1209_s10 = scalar_lea.hbm %s2170_s5, %s1359_s7 }
 0x2fe   : > { %v580_v35 = vpop.permute.xlu1 %579  ;;  %v621_v61 = vpop.permute.xlu2 %620 }
 0x2ff   : > { %v584_v38 = vsel %vm498_vm8, %v580_v35, %v582_v23  ;;  %v583_v1 = vsel %vm498_vm8, %v578_v33, %v580_v35 }
 0x300   : > { %v660_v41 = vsel %vm639_vm9, %v571_v28, %v584_v38  ;;  %v659_v7 = vsel %vm639_vm9, %v570_v5, %v583_v1  ;;  %v560_v5 = vrot.slane %v1872_v57, 1  ;;  %v680_v57 = vlaneseq }
 0x302   : > { %538 = vrot.lane.b32.xlu1 %v533_v42, %s1689_s9 }
 0x304   : > { %v593_v45 = vpop.permute.xlu0 %592  ;;  %1470 = vrot.lane.b32.xlu0 %v1469_v43, %s1689_s9 }
 0x305   : > { %1460 = vrot.lane.b32.xlu2 %v1459_v44, %s1692_s14  ;;  %v596_v3 = vsel %vm512_vm10, %v591_v34, %v593_v45  ;;  %s1213_s14 = sshll.u32 %s1209_s10, 4  ;;  %s1214_s14 = int_to_ptr.hbm [resolvable:$true] %s1213_s14 }
 0x306   : > { %v595_v46 = vpop.permute.xlu1 %594  ;;  %v661_v9 = vsel %vm642_vm11, %v659_v7, %v596_v3  ;;  %v630_v10 = vpop.permute.xlu2 %629  ;;  %v559_v3 = vrot.slane %v1867_v55, 1 }
 0x307   : > { %v597_v47 = vsel %vm512_vm10, %v593_v45, %v595_v46 }
 0x308   : > { %v662_v49 = vsel %vm642_vm11, %v660_v41, %v597_v47 }
 0x30a   : > { %633 = vrot.lane.b32.xlu1 %v628_v50, %s1694_s26 }
 0x30c   : > { %v608_v53 = vpop.permute.xlu0 %607  ;;  %551 = vrot.lane.b32.xlu0 %v546_v51, %s1694_s26 }
 0x30d   : > { %v610_v54 = vsel %vm526_vm12, %v606_v48, %v608_v53  ;;  %524 = vrot.lane.b32.xlu2 %v519_v52, %s1693_s23  ;;  %s1198_s23 = scalar_lea.sflag [#allocation4], %s1827_s17 }
 0x30e   : > { %v664_v56 = vsel %vm645_vm13, %v662_v49, %v610_v54  ;;  %v604_v59 = vpop.permute.xlu1 %603 }
 0x30f   : > { %v609_v6 = vsel %vm526_vm12, %v604_v59, %v606_v48 }
 0x310   : > { %v663_v11 = vsel %vm645_vm13, %v661_v9, %v609_v6 }
 0x314   : > { %v617_v63 = vpop.permute.xlu0 %616 }
 0x315   : > { %1475 = vrot.lane.b32.xlu2 %v1474_v62, %s1694_s26  ;;  %s1625_s26 = sshra.s32 %s1214_s14, 4  ;;  %s1626_s26 = int_to_ptr.hbm [resolvable:$true] %s1625_s26 }
 0x316   : > { %v619_v0 = vpop.permute.xlu1 %618  ;;  %p1632_p9 = scmp.lt.s32.totalorder %s1626_s26, %s2170_s5 }
 0x317   : > { %v623_v2 = vsel %vm455_vm6, %v619_v0, %v621_v61  ;;  %v622_v8 = vsel %vm455_vm6, %v617_v63, %v619_v0 }
 0x318   : > { %v1953_v4 = vsel %vm326_vm0, %v664_v56, %v623_v2  ;;  %v665_v13 = vsel %vm326_vm0, %v663_v11, %v622_v8  ;;  %v2025_v11 = vand.u32 127, %v680_v57 }
 0x31a   : > { %vm682_vm3 = vcmp.lt.s32.totalorder %v2025_v11, 3  ;;  %vm948_vm4 = vcmp.lt.s32.totalorder %v2025_v11, 127 }
 0x31c   : > { %v632_v12 = vpop.permute.xlu0 %631 }
 0x31d   : > { %v635_v16 = vsel %vm553_vm14, %v630_v10, %v632_v12 }
 0x31e   : > { %v1964_v17 = vsel %vm650_vm15, %v665_v13, %v635_v16 }
 0x31f   : > { %674 = vrot.lane.b32.xlu1 %v1964_v17, %s1695_s27  ;;  %1082 = vrot.lane.b32.xlu0 %v1964_v17, %s1696_s28 }
 0x327   : > { %743 = vrot.lane.b32.xlu1 %v1964_v17, %s1697_s6 }
 0x32f   : > { %815 = vrot.lane.b32.xlu1 %v1964_v17, %s1698_s11 }
 0x337   : > { %942 = vrot.lane.b32.xlu1 %v1964_v17, %s1699_s24 }
 0x33f   : > { %1012 = vrot.lane.b32.xlu1 %v1964_v17, %s1700_s29 }
 0x34f   : > { %v1451_v18 = vpop.permute.xlu2 %1450 }
 0x350   : > { %v1453_v25 = vunpack.i.h.bf16 %v1451_v18  ;;  %v1452_v26 = vunpack.i.l.bf16 %v1451_v18 }
 0x352   : > { %v485_v30 = vsel %vm484_vm7, %v1452_v26, %v1453_v25 }
 0x353   : > { %v640_v38 = vsel %vm639_vm9, %v1914_v15, %v485_v30 }
 0x357   : > { %v483_v19 = vpop.permute.xlu2 %482 }
 0x358   : > { %v486_v39 = vsel %vm484_vm7, %v1453_v25, %v483_v19  ;;  %vm1018_vm7 = vcmp.lt.s32.totalorder %v2025_v11, 126 }
 0x359   : > { %v641_v47 = vsel %vm639_vm9, %v1911_v14, %v486_v39  ;;  %vm1088_vm9 = vcmp.lt.s32.totalorder %v2025_v11, 125 }
 0x35f   : > { %v1461_v20 = vpop.permute.xlu2 %1460 }
 0x360   : > { %v1463_v35 = vunpack.i.h.bf16 %v1461_v20  ;;  %v1462_v36 = vunpack.i.l.bf16 %v1461_v20 }
 0x362   : > { %v513_v48 = vsel %vm512_vm10, %v1462_v36, %v1463_v35 }
 0x364   : > { %v497_v21 = vpop.permute.xlu1 %496 }
 0x366   : > { %v1456_v22 = vpop.permute.xlu0 %1455 }
 0x367   : > { %v525_v23 = vpop.permute.xlu2 %524  ;;  %v1458_v28 = vunpack.i.h.bf16 %v1456_v22  ;;  %v1457_v29 = vunpack.i.l.bf16 %v1456_v22 }
 0x369   : > { %v499_v32 = vsel %vm498_vm8, %v1457_v29, %v1458_v28  ;;  %v500_v43 = vsel %vm498_vm8, %v1458_v28, %v497_v21  ;;  %vm821_vm8 = vcmp.lt.s32.totalorder %v2025_v11, 1 }
 0x36a   : > { %v643_v40 = vsel %vm642_vm11, %v640_v38, %v499_v32  ;;  %v644_v54 = vsel %vm642_vm11, %v641_v47, %v500_v43 }
 0x36b   : > { %v646_v15 = vsel %vm645_vm13, %v643_v40, %v513_v48 }
 0x36c   : > { %v1466_v24 = vpop.permute.xlu1 %1465 }
 0x36d   : > { %v1468_v33 = vunpack.i.h.bf16 %v1466_v24  ;;  %v1467_v34 = vunpack.i.l.bf16 %v1466_v24  ;;  %v2037_v24 = vld [vmem:[#allocation5] sm:$0x7f] }
 0x36e   : > { %v511_v27 = vpop.permute.xlu0 %510  ;;  %v883_v26 = vrot.slane %v2037_v24, 3 }
 0x36f   : > { %v1476_v41 = vpop.permute.xlu2 %1475  ;;  %v527_v44 = vsel %vm526_vm12, %v1467_v34, %v1468_v33  ;;  %v514_v49 = vsel %vm512_vm10, %v1463_v35, %v511_v27  ;;  %v528_v56 = vsel %vm526_vm12, %v1468_v33, %v525_v23 }
 0x370   : > { %v1478_v50 = vunpack.i.h.bf16 %v1476_v41  ;;  %v1477_v51 = vunpack.i.l.bf16 %v1476_v41  ;;  %v648_v53 = vsel %vm326_vm0, %v646_v15, %v527_v44  ;;  %v647_v59 = vsel %vm645_vm13, %v644_v54, %v514_v49 }
 0x371   : > { %v649_v63 = vsel %vm326_vm0, %v647_v59, %v528_v56  ;;  %v1023_v15 = vrot.slane %v2037_v24, 5  ;;  %v826_v54 = vrot.slane %v2037_v24, 2 }
 0x372   : > { %v554_v61 = vsel %vm553_vm14, %v1477_v51, %v1478_v50 }
 0x374   : > { %v539_v37 = vpop.permute.xlu1 %538 }
 0x376   : > { %v1471_v42 = vpop.permute.xlu0 %1470 }
 0x377   : > { %v1473_v45 = vunpack.i.h.bf16 %v1471_v42  ;;  %v1472_v46 = vunpack.i.l.bf16 %v1471_v42  ;;  %v754_v42 = vrot.slane %v2037_v24, 1 }
 0x379   : > { %v540_v52 = vsel %vm455_vm6, %v1472_v46, %v1473_v45  ;;  %v541_v60 = vsel %vm455_vm6, %v1473_v45, %v539_v37  ;;  %vm749_vm6 = vcmp.lt.s32.totalorder %v2025_v11, 2 }
 0x37a   : > { %v651_v14 = vsel %vm650_vm15, %v648_v53, %v540_v52  ;;  %v652_v7 = vsel %vm650_vm15, %v649_v63, %v541_v60  ;;  %v953_v63 = vrot.slane %v2037_v24, 4 }
 0x37b   : > { %v654_v0 = vsel %vm653_vm1, %v651_v14, %v554_v61 }
 0x37c   : > { %v634_v58 = vpop.permute.xlu1 %633  ;;  %v2012_v9 = vsel %vm656_vm2, %v654_v0, %v559_v3 }
 0x37d   : > { %v636_v62 = vsel %vm553_vm14, %v632_v12, %v634_v58 }
 0x37e   : > { %v668_v1 = vsel %vm650_vm15, %v1953_v4, %v636_v62  ;;  %v552_v2 = vpop.permute.xlu0 %551 }
 0x37f   : > { %v555_v6 = vsel %vm553_vm14, %v1478_v50, %v552_v2  ;;  %1086 = vrot.lane.b32.xlu1 %v668_v1, %s1696_s28  ;;  %1337 = vmatpush.msk.msrb.mxu0 %vm653_vm1, %v668_v1 }
 0x380   : > { %v655_v8 = vsel %vm653_vm1, %v652_v7, %v555_v6  ;;  %678 = vrot.lane.b32.xlu2 %v668_v1, %s1695_s27 }
 0x381   : > { %v658_v4 = vsel %vm656_vm2, %v655_v8, %v560_v5 }
 0x382   : > { %927 = vmatpush.msrb.mxu0 %v658_v4  ;;  %v1479_v55 = vpack.i.bf16 %v658_v4, %v2012_v9 }
 0x383   : > { %1338 = vmatmul.msk.f32.vlgmr.msrb.gmra.mxu0 %vm687_vm5, %v883_v26 }
 0x384   : > { %1480 = vrot.lane.b32.xlu0 %v1479_v55, %s1695_s27  ;;  %s1627_s27 = scalar_lea.hbm %s1626_s26, 8 }
 0x385   : > { %p1628_p1 = scmp.ne.s32.totalorder %s1626_s26, %s1627_s27  ;;  %p1633_p2 = scmp.lt.s32.totalorder %s1631_s30, %s1627_s27 }
 0x387   : > { %p1629_p4 = pnand %p1628_p1, %p1797_p3  ;;  %p1634_p10 = por %p1633_p2, %p1632_p9 }
 0x388   : > { %747 = vrot.lane.b32.xlu2 %v668_v1, %s1697_s6 }
 0x389   : > { %p1630_p8 = pneg %p1629_p4 }
 0x38b   : > { %p1635_p11 = pnand %p1634_p10, %p1630_p8 }
 0x38c   : > { %1485 = vrot.lane.b32.xlu0 %v1479_v55, %s1697_s6 }
 0x390   : > { %819 = vrot.lane.b32.xlu2 %v668_v1, %s1698_s11 }
 0x391   : > { %v675_v10 = vpop.permute.xlu1 %674  ;;  %v2034_v22 = vpop.permute.xlu0 %1082 }
 0x394   : > { %1490 = vrot.lane.b32.xlu0 %v1479_v55, %s1698_s11 }
 0x398   : > { %946 = vrot.lane.b32.xlu2 %v668_v1, %s1699_s24 }
 0x399   : > { %v744_v18 = vpop.permute.xlu1 %743 }
 0x39c   : > { %1495 = vrot.lane.b32.xlu0 %v1479_v55, %s1699_s24 }
 0x3a0   : > { %1016 = vrot.lane.b32.xlu2 %v668_v1, %s1700_s29 }
 0x3a1   : > { %v816_v20 = vpop.permute.xlu1 %815 }
 0x3a4   : > { %1505 = vrot.lane.b32.xlu0 %v1479_v55, %s1696_s28 }
 0x3a8   : > { %1500 = vrot.lane.b32.xlu2 %v1479_v55, %s1700_s29 }
 0x3a9   : > { %v943_v23 = vpop.permute.xlu1 %942 }
 0x3b1   : > { %v1013_v34 = vpop.permute.xlu1 %1012 }
 0x3da   : > { %v679_v12 = vpop.permute.xlu2 %678 }
 0x3db   : > { %v684_v13 = vsel %vm682_vm3, %v675_v10, %v679_v12  ;;  %v686_v16 = vsel %vm682_vm3, %v679_v12, %v675_v10 }
 0x3dc   : > { %1323 = vmatpush.msk.msrb.mxu3 %vm653_vm1, %v686_v16  ;;  %1325 = vmatpush.msk.msra.mxu2 %vm653_vm1, %v684_v13  ;;  %v670_v16 = vld [vmem:[#allocation7 + $0x8] sm:$0x7f] }
 0x3e2   : > { %v748_v19 = vpop.permute.xlu2 %747 }
 0x3e3   : > { %v751_v36 = vsel %vm749_vm6, %v744_v18, %v748_v19  ;;  %v753_v37 = vsel %vm749_vm6, %v748_v19, %v744_v18  ;;  %v806_v18 = vrot.slane %v670_v16, 1  ;;  %v669_v19 = vld [vmem:[#allocation7] sm:$0x7f] }
 0x3ea   : > { %v820_v21 = vpop.permute.xlu2 %819 }
 0x3eb   : > { %v823_v45 = vsel %vm821_vm8, %v816_v20, %v820_v21  ;;  %v825_v47 = vsel %vm821_vm8, %v820_v21, %v816_v20  ;;  %v876_v20 = vrot.slane %v670_v16, 2 }
 0x3f1   : > { %v1087_v0 = vpop.permute.xlu1 %1086 }
 0x3f2   : > { %v947_v25 = vpop.permute.xlu2 %946  ;;  %v1090_v3 = vsel %vm1088_vm9, %v2034_v22, %v1087_v0  ;;  %v1092_v5 = vsel %vm1088_vm9, %v1087_v0, %v2034_v22  ;;  %v805_v22 = vrot.slane %v669_v19, 1 }
 0x3f3   : > { %v950_v27 = vsel %vm948_vm4, %v943_v23, %v947_v25  ;;  %v952_v14 = vsel %vm948_vm4, %v947_v25, %v943_v23  ;;  %v875_v25 = vrot.slane %v669_v19, 2 }
 0x3f4   : > { %1339 = vmatpush.msk.msrb.mxu1 %vm653_vm1, %v950_v27 }
 0x3f6   : > { %v1481_v28 = vpop.permute.xlu0 %1480 }
 0x3f7   : > { %v1483_v29 = vunpack.i.h.bf16 %v1481_v28  ;;  %v1482_v30 = vunpack.i.l.bf16 %v1481_v28  ;;  %v933_v28 = vrot.slane %v670_v16, 3 }
 0x3f9   : > { %v685_v32 = vsel %vm682_vm3, %v1483_v29, %v1482_v30  ;;  %v683_v33 = vsel %vm682_vm3, %v1482_v30, %v1483_v29 }
 0x3fa   : > { %v1017_v35 = vpop.permute.xlu2 %1016  ;;  %712 = vmatpush.msrb.mxu3 %v685_v32  ;;  %732 = vmatpush.msra.mxu2 %v683_v33  ;;  %v932_v33 = vrot.slane %v669_v19, 3 }
 0x3fb   : > { %v1022_v38 = vsel %vm1018_vm7, %v1017_v35, %v1013_v34  ;;  %1324 = vmatmul.msk.f32.vlgmr.msrb.gmra.mxu3 %vm687_vm5, %v2037_v24  ;;  %1326 = vmatmul.msk.f32.vlgmr.msra.gmra.mxu2 %vm687_vm5, %v2037_v24  ;;  %v1020_v60 = vsel %vm1018_vm7, %v1013_v34, %v1017_v35  ;;  %v1003_v34 = vrot.slane %v670_v16, 4 }
 0x3fc   : > { %1327 = vmatpush.msk.msra.mxu3 %vm653_vm1, %v753_v37  ;;  %1329 = vmatpush.msk.msrb.mxu2 %vm653_vm1, %v751_v36 }
 0x3fd   : > { %1345 = vmatpush.msk.msra.mxu0 %vm653_vm1, %v1022_v38 }
 0x3fe   : > { %v1486_v39 = vpop.permute.xlu0 %1485 }
 0x3ff   : > { %v1488_v40 = vunpack.i.h.bf16 %v1486_v39  ;;  %v1487_v41 = vunpack.i.l.bf16 %v1486_v39 }
 0x400   : > { %v929_v21 = vpop.f32.mrf.mxu0 }
 0x401   : > { %v752_v43 = vsel %vm749_vm6, %v1488_v40, %v1487_v41  ;;  %v750_v44 = vsel %vm749_vm6, %v1487_v41, %v1488_v40  ;;  %v937_v38 = vmul.f32 %v933_v28, %v929_v21 }
 0x402   : > { %v1501_v46 = vpop.permute.xlu2 %1500  ;;  %778 = vmatpush.msra.mxu3 %v752_v43  ;;  %798 = vmatpush.msrb.mxu2 %v750_v44 }
 0x403   : > { %v1503_v48 = vunpack.i.h.bf16 %v1501_v46  ;;  %v1502_v49 = vunpack.i.l.bf16 %v1501_v46  ;;  %1328 = vmatmul.msk.f32.vlgmr.msra.gmra.mxu3 %vm687_vm5, %v754_v42  ;;  %1330 = vmatmul.msk.f32.vlgmr.msrb.gmra.mxu2 %vm687_vm5, %v754_v42  ;;  %v1002_v42 = vrot.slane %v669_v19, 4 }
 0x404   : > { %1331 = vmatpush.msk.msrb.mxu3 %vm653_vm1, %v825_v47  ;;  %1333 = vmatpush.msk.msra.mxu2 %vm653_vm1, %v823_v45  ;;  %v1073_v45 = vrot.slane %v670_v16, 5 }
 0x405   : > { %v1021_v50 = vsel %vm1018_vm7, %v1503_v48, %v1502_v49 }
 0x406   : > { %1067 = vmatpush.msra.mxu0 %v1021_v50  ;;  %v1491_v51 = vpop.permute.xlu0 %1490  ;;  %v1072_v50 = vrot.slane %v669_v19, 5 }
 0x407   : > { %v1493_v52 = vunpack.i.h.bf16 %v1491_v51  ;;  %v1492_v53 = vunpack.i.l.bf16 %v1491_v51  ;;  %1346 = vmatmul.msk.f32.vlgmr.msra.gmra.mxu0 %vm687_vm5, %v1023_v15 }
 0x409   : > { %v824_v56 = vsel %vm821_vm8, %v1493_v52, %v1492_v53  ;;  %v822_v59 = vsel %vm821_vm8, %v1492_v53, %v1493_v52  ;;  %v1143_v53 = vrot.slane %v670_v16, 6 }
 0x40a   : > { %850 = vmatpush.msrb.mxu3 %v824_v56  ;;  %870 = vmatpush.msra.mxu2 %v822_v59 }
 0x40b   : > { %1332 = vmatmul.msk.f32.vlgmr.msrb.gmra.mxu3 %vm687_vm5, %v826_v54  ;;  %1334 = vmatmul.msk.f32.vlgmr.msra.gmra.mxu2 %vm687_vm5, %v826_v54  ;;  %v1142_v54 = vrot.slane %v669_v19, 6 }
 0x40c   : > { %1335 = vmatpush.msk.msra.mxu3 %vm653_vm1, %v1964_v17  ;;  %1341 = vmatpush.msk.msrb.mxu2 %vm653_vm1, %v952_v14  ;;  %v1019_v17 = vsel %vm1018_vm7, %v1502_v49, %v1503_v48 }
 0x40e   : > { %907 = vmatpush.msra.mxu3 %v2012_v9  ;;  %v1496_v58 = vpop.permute.xlu0 %1495  ;;  %v1093_v9 = vrot.slane %v2037_v24, 6 }
 0x40f   : > { %v1498_v61 = vunpack.i.h.bf16 %v1496_v58  ;;  %v1497_v62 = vunpack.i.l.bf16 %v1496_v58 }
 0x410   : > { %1343 = vmatpush.msk.msrb.mxu3 %vm653_vm1, %v1020_v60 }
 0x411   : > { %v949_v1 = vsel %vm948_vm4, %v1497_v62, %v1498_v61  ;;  %v951_v2 = vsel %vm948_vm4, %v1498_v61, %v1497_v62 }
 0x412   : > { %1047 = vmatpush.msrb.mxu3 %v1019_v17  ;;  %977 = vmatpush.msrb.mxu1 %v949_v1 }
 0x413   : > { %997 = vmatpush.msrb.mxu2 %v951_v2  ;;  %1336 = vmatmul.msk.f32.vlgmr.msra.gmra.mxu3 %vm687_vm5, %v883_v26 }
 0x414   : > { %1342 = vmatmul.msk.f32.vlgmr.msrb.gmra.mxu2 %vm687_vm5, %v953_v63  ;;  %1347 = vmatpush.msk.msra.mxu1 %vm653_vm1, %v1090_v3 }
 0x415   : > { %1349 = vmatpush.msk.msra.mxu2 %vm653_vm1, %v1092_v5  ;;  %1340 = vmatmul.msk.f32.vlgmr.msrb.gmra.mxu1 %vm687_vm5, %v953_v63 }
 0x416   : > { %v1506_v6 = vpop.permute.xlu0 %1505 }
 0x417   : > { %v1508_v7 = vunpack.i.h.bf16 %v1506_v6  ;;  %v1507_v8 = vunpack.i.l.bf16 %v1506_v6 }
 0x419   : > { %v1089_v4 = vsel %vm1088_vm9, %v1507_v8, %v1508_v7  ;;  %v1091_v55 = vsel %vm1088_vm9, %v1508_v7, %v1507_v8 }
 0x41a   : > { %1117 = vmatpush.msra.mxu1 %v1089_v4  ;;  %1137 = vmatpush.msra.mxu2 %v1091_v55 }
 0x41b   : > { %1344 = vmatmul.msk.f32.vlgmr.msrb.gmra.mxu3 %vm687_vm5, %v1023_v15 }
 0x41c   : > { %1350 = vmatmul.msk.f32.vlgmr.msra.gmra.mxu2 %vm687_vm5, %v1093_v9 }
 0x41d   : > { %1348 = vmatmul.msk.f32.vlgmr.msra.gmra.mxu1 %vm687_vm5, %v1093_v9 }
 0x47e   : > { %v714_v57 = vpop.f32.mrf.mxu3  ;;  %v734_v10 = vpop.f32.mrf.mxu2 }
 0x47f   : > { %v738_v26 = vmul.f32 %v734_v10, %v670_v16  ;;  %v737_v35 = vmul.f32 %v714_v57, %v669_v19 }
 0x484   : > { %v1069_v47 = vpop.f32.mrf.mxu0 }
 0x485   : > { %v1077_v52 = vmul.f32 %v1073_v45, %v1069_v47 }
 0x486   : > { %v780_v12 = vpop.f32.mrf.mxu3  ;;  %v800_v13 = vpop.f32.mrf.mxu2 }
 0x487   : > { %v810_v24 = vmul.f32 %v806_v18, %v800_v13  ;;  %v809_v29 = vmul.f32 %v805_v22, %v780_v12 }
 0x489   : > { %v812_v32 = vadd.f32 %v810_v24, %v738_v26  ;;  %v811_v39 = vadd.f32 %v809_v29, %v737_v35 }
 0x48e   : > { %v852_v11 = vpop.f32.mrf.mxu3  ;;  %v872_v23 = vpop.f32.mrf.mxu2 }
 0x48f   : > { %v880_v27 = vmul.f32 %v876_v20, %v872_v23  ;;  %v879_v36 = vmul.f32 %v875_v25, %v852_v11 }
 0x491   : > { %v882_v37 = vadd.f32 %v880_v27, %v812_v32  ;;  %v881_v46 = vadd.f32 %v879_v36, %v811_v39 }
 0x492   : > { %v979_v30 = vpop.f32.mrf.mxu1 }
 0x493   : > { %v939_v48 = vadd.f32 %v937_v38, %v882_v37  ;;  %v1006_v15 = vmul.f32 %v1002_v42, %v979_v30 }
 0x496   : > { %v909_v40 = vpop.f32.mrf.mxu3 }
 0x497   : > { %v999_v41 = vpop.f32.mrf.mxu2  ;;  %v936_v43 = vmul.f32 %v932_v33, %v909_v40 }
 0x498   : > { %v1007_v44 = vmul.f32 %v1003_v34, %v999_v41 }
 0x499   : > { %v938_v49 = vadd.f32 %v936_v43, %v881_v46 }
 0x49a   : > { %v1009_v51 = vadd.f32 %v1007_v44, %v939_v48  ;;  %v1119_v56 = vpop.f32.mrf.mxu1 }
 0x49b   : > { %v1008_v59 = vadd.f32 %v1006_v15, %v938_v49  ;;  %v1146_v63 = vmul.f32 %v1142_v54, %v1119_v56 }
 0x49c   : > { %v1079_v58 = vadd.f32 %v1077_v52, %v1009_v51 }
 0x49e   : > { %v1049_v14 = vpop.f32.mrf.mxu3 }
 0x49f   : > { %v1139_v60 = vpop.f32.mrf.mxu2  ;;  %v1076_v61 = vmul.f32 %v1072_v50, %v1049_v14 }
 0x4a0   : > { %v1147_v62 = vmul.f32 %v1143_v53, %v1139_v60 }
 0x4a1   : > { %v1078_v0 = vadd.f32 %v1076_v61, %v1008_v59 }
 0x4a2   : > { %v1149_v17 = vadd.f32 %v1147_v62, %v1079_v58 }
 0x4a3   : > { %v1148_v2 = vadd.f32 %v1146_v63, %v1078_v0 }
 0x4a4   : > { %v1352_v1 = vmul.f32 -1.442695, %v1149_v17 }
 0x4a5   : > { %v1351_v3 = vmul.f32 -1.442695, %v1148_v2 }
 0x4a6   : > { %1513 = vpow2.f32 %v1352_v1 }
 0x4a7   : > { %1515 = vpow2.f32 %v1351_v3 }
 0x4ac   : > { %v1514_v5 = vpop.eup %1513 }
 0x4ad   : > { %v1157_v6 = vadd.f32 1.0, %v1514_v5  ;;  %v1516_v7 = vpop.eup %1515 }
 0x4ae   : > { %v1156_v8 = vadd.f32 1.0, %v1516_v7 }
 0x4af   : > { %1517 = vrcp.f32 %v1157_v6  ;;  %v1184_v10 = vand.u32 2147483648, %v1157_v6  ;;  %v1182_v16 = vand.u32 2147483647, %v1157_v6  ;;  %vm1178_vm11 = vweird.f32 %v1157_v6 }
 0x4b0   : > { %1519 = vrcp.f32 %v1156_v8  ;;  %v1169_v20 = vand.u32 2147483648, %v1156_v8  ;;  %v1167_v11 = vand.u32 2147483647, %v1156_v8  ;;  %vm1163_vm15 = vweird.f32 %v1156_v8 }
 0x4b1   : > { %v1185_v21 = vor.u32 1.1754944e-38, %v1184_v10  ;;  %vm1183_vm14 = vcmp.eq.f32.partialorder %v1182_v16, 8.507059e+37 }
 0x4b2   : > { %v1170_v26 = vor.u32 1.1754944e-38, %v1169_v20  ;;  %vm1168_vm2 = vcmp.eq.f32.partialorder %v1167_v11, 8.507059e+37 }
 0x4b5   : > { %v1518_v9 = vpop.eup %1517 }
 0x4b6   : > { %v1174_v4 = vmul.f32 %v1518_v9, %v1157_v6  ;;  %v1520_v55 = vpop.eup %1519  ;;  %vm1179_vm10 = vweird.f32 %v1518_v9 }
 0x4b7   : > { %v1159_v12 = vmul.f32 %v1520_v55, %v1156_v8  ;;  %vm1180_vm12 = vmor %vm1178_vm11, %vm1179_vm10  ;;  %vm1164_vm13 = vweird.f32 %v1520_v55 }
 0x4b8   : > { %v1175_v57 = vsub.f32 1.0, %v1174_v4  ;;  %vm1165_vm1 = vmor %vm1163_vm15, %vm1164_vm13 }
 0x4b9   : > { %v1160_v18 = vsub.f32 1.0, %v1159_v12 }
 0x4ba   : > { %v1176_v13 = vmul.f32 %v1518_v9, %v1175_v57 }
 0x4bb   : > { %v1161_v22 = vmul.f32 %v1520_v55, %v1160_v18 }
 0x4bc   : > { %v1177_v19 = vadd.f32 %v1518_v9, %v1176_v13 }
 0x4bd   : > { %v1162_v24 = vadd.f32 %v1520_v55, %v1161_v22 }
 0x4be   : > { %v1181_v23 = vsel %vm1180_vm12, %v1518_v9, %v1177_v19 }
 0x4bf   : > { %v1186_v25 = vsel %vm1183_vm14, %v1185_v21, %v1181_v23  ;;  %v1166_v28 = vsel %vm1165_vm1, %v1520_v55, %v1162_v24 }
 0x4c0   : > { %v1189_v27 = vperm.slane %v1186_v25, 0  ;;  %v1171_v29 = vsel %vm1168_vm2, %v1170_v26, %v1166_v28 }
 0x4c1   : > { %v1188_v32 = vperm.slane %v1171_v29, 0 }
 0x4c2   : > { %v1192_v30 = vrot.slane %v1189_v27, 4 }
 0x4c4   : > { %v1193_v33 = vsel %vm326_vm0, %v1188_v32, %v1192_v30 }
 0x4c5   : > { %v1195_v34 = vmul.f32 %v1193_v33, %v1853_v31 }
 0x4c7   : > { %1196 = vst [vmem:[%s271_s22] sm:$0xff] %v1195_v34 }
 0x4c8   : > { %1638 = shalt.err (!%p1635_p11)
}
 0x4c9   : > { %1370 = dma.vmem_to_hbm [thread:$0]  (%p1797_p3), %s1212_s13, 128, %s1214_s14, %s1198_s23  }
 0x4ca PF: > { %s1225_s17 = sand.u32 1, %s1669_s18   ;;  %p2176_p12 = scmp.ge.s32.totalorder %s1681_s21, 2 }
 0x4cb   : > { %s1226_s29 = scalar_lea.sflag [#allocation4], %s1225_s17 }
 0x4cc   : > { %p1384_p13 = pnand %p2176_p12, %p1766_p6 }
 0x4ce   : > { %p1385_p0 = pneg %p1384_p13 }
 0x4d0   : > { %1664 = dma.done.wait (%p1385_p0), %s1226_s29, 128  }
 0x4d1   : > { %1666 = vsyncadd (%p1385_p0), %s1226_s29, 4294967168  ;;  %p19_p5 = scmp.ge.s32.totalorder %s1787_s12, 4   ;;  %s2177_s18 = smov %s1673_s19 }
 0x4d2   : > { %s2178_s19 = smov %s1677_s20  ;;  %s2179_s20 = smov %s1803_s16 }
 0x4d3   : > { %s2180_s21 = smov %s1787_s12  ;;  %21 = sbr.rel (!%p19_p5) target bundleno = 6 (0x6), region = 93 }
 0x4d8   :  { %1232 = vsyncpa [#allocation3], 1 }
 0x4d9   :  { %1234 = vsyncpa [#allocation3 + $0x1], 1 }
 0x4da   :  { %1235 = vsyncpa [#allocation6], 1 }
 0x4db   :  { %1236 = vsyncpa [#allocation4], 1 }
 0x4dc   :  { %1238 = vsyncpa [#allocation4 + $0x1], 1 }

</bundles_post_ra>
